<compile_context>
chip_gen: v6e
topology: v6e:2x2x1
jax: 0.10.0
libtpu: 0.0.40
codegen_flags: <defaults>
</compile_context>

<pallas_src>
import math

import numpy as np
import jax
import jax.numpy as jnp
from jax.experimental import pallas as pl
from jax.experimental.pallas import tpu as pltpu


# ------------------------------ small helpers -------------------------------
def _round_up(x, m):
    return ((x + m - 1) // m) * m


def _sublane_pack(dtype):
    # Native sublane packing: 8 rows for 4-byte dtypes, 16 for 2-byte, 32 for 1-byte.
    return max(8, 32 // jnp.dtype(dtype).itemsize)


def _vmem_capacity_bytes():
    try:
        info = pltpu.get_tpu_info()
        cap = int(getattr(info, "vmem_capacity_bytes", 0) or 0)
        if cap > 0:
            return cap
    except Exception:
        pass
    return 64 * 1024 * 1024  # conservative fallback == v7x per-TensorCore VMEM


def _const_spec(shape):
    """BlockSpec for a grid-invariant (resident) operand.

    Requests single-buffering (the index_map is constant, so double-buffering
    only wastes VMEM). Falls back to a plain BlockSpec on jax versions without
    pipeline_mode / pl.Buffered.
    """
    index_map = lambda *_: (0,) * len(shape)
    try:
        return pl.BlockSpec(shape, index_map, pipeline_mode=pl.Buffered(1))
    except (AttributeError, TypeError):
        return pl.BlockSpec(shape, index_map)


# --------------------------------- GELU --------------------------------------
def _erf_f32(x):
    # Abramowitz & Stegun 7.1.26 rational approximation of erf
    # (max abs error ~1.5e-7, i.e. f32 rounding level). VPU/EUP-friendly ops only.
    a1 = 0.254829592
    a2 = -0.284496736
    a3 = 1.421413741
    a4 = -1.453152027
    a5 = 1.061405429
    p = 0.3275911
    ax = jnp.abs(x)
    d = 1.0 + p * ax
    # EUP approximate reciprocal (frees VPU slots, co-issues with the exp below)
    # + one Newton-Raphson step so the erf error stays at the polynomial level.
    t = pl.reciprocal(d, approx=True)
    t = t * (2.0 - d * t)
    poly = t * (a1 + t * (a2 + t * (a3 + t * (a4 + t * a5))))
    e = 1.0 - poly * jnp.exp(-ax * ax)
    return jnp.where(x < 0.0, -e, e)


def _gelu_exact(x):
    # Matches torch.nn.GELU() (exact erf form) to ~f32 precision.
    return 0.5 * x * (1.0 + _erf_f32(x * np.float32(1.0 / math.sqrt(2.0))))


# ------------------------------ fused kernels --------------------------------
def _mlp_resident_kernel(x_ref, w1_ref, b1_ref, w2_ref, b2_ref, o_ref):
    # fc1: native-precision operands straight into the MXU, f32 accumulation.
    h = jnp.dot(x_ref[...], w1_ref[...], preferred_element_type=jnp.float32)
    h = _gelu_exact(h + b1_ref[...].astype(jnp.float32))
    # dropout(p=0.0) == identity
    # fc2: cast hidden back to the weight dtype (no-op for f32, bf16 for bf16 weights).
    y = jnp.dot(h.astype(w2_ref.dtype), w2_ref[...],
                preferred_element_type=jnp.float32)
    o_ref[...] = (y + b2_ref[...].astype(jnp.float32)).astype(o_ref.dtype)


def _mlp_streamed_kernel(x_ref, w1_ref, b1_ref, w2_ref, b2_ref, o_ref, acc_ref):
    # Hidden-dim-streamed variant: grid = (row blocks, hidden slabs). Weight slabs
    # (d_in, bk) and (bk, d_out) are streamed; partial fc2 results accumulate in
    # an f32 VMEM scratch; GELU is applied per slab.
    k = pl.program_id(1)

    @pl.when(k == 0)
    def _init():
        acc_ref[...] = jnp.zeros_like(acc_ref)

    h = jnp.dot(x_ref[...], w1_ref[...], preferred_element_type=jnp.float32)
    h = _gelu_exact(h + b1_ref[...].astype(jnp.float32))
    acc_ref[...] += jnp.dot(h.astype(w2_ref.dtype), w2_ref[...],
                            preferred_element_type=jnp.float32)

    @pl.when(k == pl.num_programs(1) - 1)
    def _finalize():
        o_ref[...] = (acc_ref[...] + b2_ref[...].astype(jnp.float32)).astype(o_ref.dtype)


# --------------------------------- wrapper ------------------------------------
def mlp_forward(params, x, *, block_m=512, block_k=512, vmem_budget_bytes=None):
    """y = fc2(GELU(fc1(x))).  x: (..., D_in).  Weights stored as (in, out).

    Perf note: pick d_in / d_hid / d_out as multiples of 128 (lanes) for
    unmasked lane-dense loads/stores and full MXU passes.
    """
    w1, b1, w2, b2 = params["w1"], params["b1"], params["w2"], params["b2"]
    d_in, d_hid = w1.shape
    d_out = w2.shape[1]

    lead = x.shape[:-1]
    x2 = x.reshape(-1, d_in)
    m = x2.shape[0]
    out_dtype = x.dtype

    x_item = jnp.dtype(x2.dtype).itemsize
    w_item = jnp.dtype(w1.dtype).itemsize
    o_item = jnp.dtype(out_dtype).itemsize
    pack = _sublane_pack(x2.dtype)

    if vmem_budget_bytes is None:
        # Stay well inside per-TensorCore VMEM (v7x: 64 MiB; v5e/v6e: 128 MiB).
        vmem_budget_bytes = int(_vmem_capacity_bytes() * 0.75)

    # ----- row tile (dtype-aware sublane rounding, no input padding) -----
    bm = min(_round_up(block_m, pack), _round_up(m, pack))
    if m > pack:
        # At least 2 grid steps so the "parallel" axis can be split across the
        # two v7x TensorCores (no-op on single-TC v5e/v6e).
        bm = min(bm, _round_up(pl.cdiv(m, 2), pack))

    def resident_footprint(bm_):
        w_bytes = (d_in * d_hid + d_hid * d_out + d_hid + d_out) * w_item  # single-buffered
        io_bytes = 2 * bm_ * (d_in * x_item + d_out * o_item)              # double-buffered tiles
        tmp_bytes = bm_ * (d_hid + d_out) * 4                              # f32 intermediates
        return w_bytes + io_bytes + tmp_bytes

    while bm > pack and resident_footprint(bm) > vmem_budget_bytes:
        bm = max(pack, _round_up(bm // 2, pack))

    grid_m = pl.cdiv(m, bm)  # edge block handled by Pallas masking: no pad / slice

    b1_2 = b1.reshape(1, d_hid)
    b2_2 = b2.reshape(1, d_out)

    cost = pl.CostEstimate(
        flops=2 * m * (d_in * d_hid + d_hid * d_out),
        transcendentals=2 * m * d_hid,  # exp + reciprocal per hidden element
        bytes_accessed=(m * d_in * x_item
                        + (w1.size + w2.size + b1.size + b2.size) * w_item
                        + m * d_out * o_item),
    )

    # ----- choose resident vs hidden-dim-streamed path -----
    use_streamed = resident_footprint(bm) > vmem_budget_bytes
    bk = 0
    if use_streamed:
        bk = (min(block_k, d_hid) // 128) * 128
        while bk >= 128 and d_hid % bk:
            bk -= 128
        if bk < 128:
            use_streamed = False  # d_hid not 128-splittable; keep weights resident

    if not use_streamed:
        out = pl.pallas_call(
            _mlp_resident_kernel,
            out_shape=jax.ShapeDtypeStruct((m, d_out), out_dtype),
            grid=(grid_m,),
            in_specs=[
                pl.BlockSpec((bm, d_in), lambda i: (i, 0)),   # streamed row tile
                _const_spec((d_in, d_hid)),                   # fc1 weight (resident)
                _const_spec((1, d_hid)),                      # fc1 bias
                _const_spec((d_hid, d_out)),                  # fc2 weight (resident)
                _const_spec((1, d_out)),                      # fc2 bias
            ],
            out_specs=pl.BlockSpec((bm, d_out), lambda i: (i, 0)),
            compiler_params=pltpu.CompilerParams(
                dimension_semantics=("parallel",),
                vmem_limit_bytes=int(vmem_budget_bytes)),
            cost_estimate=cost,
        )(x2, w1, b1_2, w2, b2_2)
    else:
        out = pl.pallas_call(
            _mlp_streamed_kernel,
            out_shape=jax.ShapeDtypeStruct((m, d_out), out_dtype),
            grid=(grid_m, d_hid // bk),
            in_specs=[
                pl.BlockSpec((bm, d_in), lambda i, k: (i, 0)),
                pl.BlockSpec((d_in, bk), lambda i, k: (0, k)),   # fc1 weight slab
                pl.BlockSpec((1, bk), lambda i, k: (0, k)),      # fc1 bias slab
                pl.BlockSpec((bk, d_out), lambda i, k: (k, 0)),  # fc2 weight slab
                _const_spec((1, d_out)),                         # fc2 bias (resident)
            ],
            out_specs=pl.BlockSpec((bm, d_out), lambda i, k: (i, 0)),
            scratch_shapes=[pltpu.VMEM((bm, d_out), jnp.float32)],
            compiler_params=pltpu.CompilerParams(
                dimension_semantics=("parallel", "arbitrary"),
                vmem_limit_bytes=int(vmem_budget_bytes)),
            cost_estimate=cost,
        )(x2, w1, b1_2, w2, b2_2)

    return out.reshape(*lead, d_out)


# --------------------------------- params ------------------------------------
def init_params(key, d_in, d_hid, d_out):
    """PyTorch nn.Linear default init; weights stored transposed as (in, out)."""
    k1, k2, k3, k4 = jax.random.split(key, 4)

    def linear(kw, kb, fan_in, fan_out):
        bound = 1.0 / np.sqrt(fan_in)
        w = jax.random.uniform(kw, (fan_in, fan_out), jnp.float32, -bound, bound)
        b = jax.random.uniform(kb, (fan_out,), jnp.float32, -bound, bound)
        return w, b

    w1, b1 = linear(k1, k2, d_in, d_hid)
    w2, b2 = linear(k3, k4, d_hid, d_out)
    return {"w1": w1, "b1": b1, "w2": w2, "b2": b2}


if __name__ == "__main__":
    key = jax.random.PRNGKey(0)
    kx, kp = jax.random.split(key)

    # Small, lane-aligned shapes consistent with the module: tokens (B, N, D_in).
    B, N, D_IN, D_HID, D_OUT = 2, 8, 128, 256, 128
    x = jax.random.normal(kx, (B, N, D_IN), jnp.float32)
    params = init_params(kp, D_IN, D_HID, D_OUT)

    out = jax.jit(mlp_forward)(params, x)
    out = jax.block_until_ready(out)

    # Pure-JAX reference: fc1 -> exact GELU -> fc2 (dropout p=0.0 is identity).
    ref = jax.nn.gelu(x.reshape(-1, D_IN) @ params["w1"] + params["b1"],
                      approximate=False)
    ref = (ref @ params["w2"] + params["b2"]).reshape(B, N, D_OUT)

    assert out.shape == (B, N, D_OUT), out.shape
    assert bool(jnp.all(jnp.isfinite(out)))
    # Error budget: A&S erf polynomial (~1.5e-7) + EUP approx reciprocal with one
    # Newton step (<~1e-5 rel worst case), accumulated over the fc2 reduction.
    err = float(jnp.max(jnp.abs(out - ref)))
    assert err < 2e-4, err
    print("KERNEL_OK")
</pallas_src>

<mosaic_0001>
module attributes {stable_mosaic.version = 11 : i64} {
  func.func @_mlp_resident_kernel(%arg0: i32, %arg1: memref<8x128xf32, #tpu.memory_space<vmem>>, %arg2: memref<128x256xf32, #tpu.memory_space<vmem>>, %arg3: memref<1x256xf32, #tpu.memory_space<vmem>>, %arg4: memref<256x128xf32, #tpu.memory_space<vmem>>, %arg5: memref<1x128xf32, #tpu.memory_space<vmem>>, %arg6: memref<8x128xf32, #tpu.memory_space<vmem>>) attributes {dimension_semantics = [#tpu.dimension_semantics<parallel>], iteration_bounds = array<i64: 2>, scalar_prefetch = 0 : i64, scratch_operands = 0 : i64, tpu.core_type = #tpu.core_type<tc>, window_params = [{transform_indices = @transform_0, window_bounds = array<i64: 8, 128>}, {pipeline_mode = #tpu.pipeline_mode<synchronous>, transform_indices = @transform_1, window_bounds = array<i64: 128, 256>}, {pipeline_mode = #tpu.pipeline_mode<synchronous>, transform_indices = @transform_2, window_bounds = array<i64: 1, 256>}, {pipeline_mode = #tpu.pipeline_mode<synchronous>, transform_indices = @transform_3, window_bounds = array<i64: 256, 128>}, {pipeline_mode = #tpu.pipeline_mode<synchronous>, transform_indices = @transform_4, window_bounds = array<i64: 1, 128>}, {transform_indices = @transform_5, window_bounds = array<i64: 8, 128>}]} {
    %c0 = arith.constant 0 : index
    %c0_0 = arith.constant 0 : index
    %0 = vector.load %arg1[%c0, %c0_0] : memref<8x128xf32, #tpu.memory_space<vmem>>, vector<8x128xf32>
    %c0_1 = arith.constant 0 : index
    %c0_2 = arith.constant 0 : index
    %1 = vector.load %arg2[%c0_1, %c0_2] : memref<128x256xf32, #tpu.memory_space<vmem>>, vector<128x256xf32>
    %cst = arith.constant dense<0.000000e+00> : vector<8x256xf32>
    %2 = tpu.matmul %0, %1, %cst {dimension_numbers = #tpu.dot_dimension_numbers<[1], [0], [0], [1], [0, 0, 1, 1], [], []>} : vector<8x128xf32>, vector<128x256xf32>, vector<8x256xf32> -> vector<8x256xf32>
    %c0_3 = arith.constant 0 : index
    %c0_4 = arith.constant 0 : index
    %3 = vector.load %arg3[%c0_3, %c0_4] : memref<1x256xf32, #tpu.memory_space<vmem>>, vector<1x256xf32>
    %4 = vector.broadcast %3 : vector<1x256xf32> to vector<8x256xf32>
    %5 = arith.addf %2, %4 : vector<8x256xf32>
    %cst_5 = arith.constant 5.000000e-01 : f32
    %6 = vector.broadcast %cst_5 : f32 to vector<8x256xf32>
    %7 = arith.mulf %6, %5 : vector<8x256xf32>
    %cst_6 = arith.constant 0.707106769 : f32
    %8 = vector.broadcast %cst_6 : f32 to vector<8x256xf32>
    %9 = arith.mulf %5, %8 : vector<8x256xf32>
    %10 = math.absf %9 : vector<8x256xf32>
    %cst_7 = arith.constant 0.327591091 : f32
    %11 = vector.broadcast %cst_7 : f32 to vector<8x256xf32>
    %12 = arith.mulf %11, %10 : vector<8x256xf32>
    %cst_8 = arith.constant 1.000000e+00 : f32
    %13 = vector.broadcast %cst_8 : f32 to vector<8x256xf32>
    %14 = arith.addf %13, %12 : vector<8x256xf32>
    %15 = tpu.reciprocal %14 {approx = true} : vector<8x256xf32> -> vector<8x256xf32>
    %16 = arith.mulf %14, %15 : vector<8x256xf32>
    %cst_9 = arith.constant 2.000000e+00 : f32
    %17 = vector.broadcast %cst_9 : f32 to vector<8x256xf32>
    %18 = arith.subf %17, %16 : vector<8x256xf32>
    %19 = arith.mulf %15, %18 : vector<8x256xf32>
    %cst_10 = arith.constant 1.06140542 : f32
    %20 = vector.broadcast %cst_10 : f32 to vector<8x256xf32>
    %21 = arith.mulf %19, %20 : vector<8x256xf32>
    %cst_11 = arith.constant -1.45315206 : f32
    %22 = vector.broadcast %cst_11 : f32 to vector<8x256xf32>
    %23 = arith.addf %22, %21 : vector<8x256xf32>
    %24 = arith.mulf %19, %23 : vector<8x256xf32>
    %cst_12 = arith.constant 1.42141378 : f32
    %25 = vector.broadcast %cst_12 : f32 to vector<8x256xf32>
    %26 = arith.addf %25, %24 : vector<8x256xf32>
    %27 = arith.mulf %19, %26 : vector<8x256xf32>
    %cst_13 = arith.constant -0.284496725 : f32
    %28 = vector.broadcast %cst_13 : f32 to vector<8x256xf32>
    %29 = arith.addf %28, %27 : vector<8x256xf32>
    %30 = arith.mulf %19, %29 : vector<8x256xf32>
    %cst_14 = arith.constant 0.254829586 : f32
    %31 = vector.broadcast %cst_14 : f32 to vector<8x256xf32>
    %32 = arith.addf %31, %30 : vector<8x256xf32>
    %33 = arith.mulf %19, %32 : vector<8x256xf32>
    %cst_15 = arith.constant 0.000000e+00 : f32
    %34 = vector.broadcast %cst_15 : f32 to vector<8x256xf32>
    %35 = arith.subf %34, %10 : vector<8x256xf32>
    %36 = arith.mulf %35, %10 : vector<8x256xf32>
    %37 = math.exp %36 : vector<8x256xf32>
    %38 = arith.mulf %33, %37 : vector<8x256xf32>
    %cst_16 = arith.constant 1.000000e+00 : f32
    %39 = vector.broadcast %cst_16 : f32 to vector<8x256xf32>
    %40 = arith.subf %39, %38 : vector<8x256xf32>
    %cst_17 = arith.constant 0.000000e+00 : f32
    %41 = vector.broadcast %cst_17 : f32 to vector<8x256xf32>
    %42 = arith.cmpf olt, %9, %41 : vector<8x256xf32>
    %cst_18 = arith.constant 0.000000e+00 : f32
    %43 = vector.broadcast %cst_18 : f32 to vector<8x256xf32>
    %44 = arith.subf %43, %40 : vector<8x256xf32>
    %45 = arith.select %42, %44, %40 : vector<8x256xi1>, vector<8x256xf32>
    %cst_19 = arith.constant 1.000000e+00 : f32
    %46 = vector.broadcast %cst_19 : f32 to vector<8x256xf32>
    %47 = arith.addf %46, %45 : vector<8x256xf32>
    %48 = arith.mulf %7, %47 : vector<8x256xf32>
    %c0_20 = arith.constant 0 : index
    %c0_21 = arith.constant 0 : index
    %49 = vector.load %arg4[%c0_20, %c0_21] : memref<256x128xf32, #tpu.memory_space<vmem>>, vector<256x128xf32>
    %cst_22 = arith.constant dense<0.000000e+00> : vector<8x128xf32>
    %50 = tpu.matmul %48, %49, %cst_22 {dimension_numbers = #tpu.dot_dimension_numbers<[1], [0], [0], [1], [0, 0, 1, 1], [], []>} : vector<8x256xf32>, vector<256x128xf32>, vector<8x128xf32> -> vector<8x128xf32>
    %c0_23 = arith.constant 0 : index
    %c0_24 = arith.constant 0 : index
    %51 = vector.load %arg5[%c0_23, %c0_24] : memref<1x128xf32, #tpu.memory_space<vmem>>, vector<1x128xf32>
    %52 = vector.broadcast %51 : vector<1x128xf32> to vector<8x128xf32>
    %53 = arith.addf %50, %52 : vector<8x128xf32>
    %c0_25 = arith.constant 0 : index
    %c0_26 = arith.constant 0 : index
    %54 = vector.load %arg6[%c0_25, %c0_26] : memref<8x128xf32, #tpu.memory_space<vmem>>, vector<8x128xf32>
    tpu.vector_store %arg6[%c0_25, %c0_26], %53 {strides = array<i32>} : memref<8x128xf32, #tpu.memory_space<vmem>>, vector<8x128xf32>,
    return
  }
  func.func @transform_0(%arg0: i32) -> (i32, i32) {
    %c0_i32 = arith.constant 0 : i32
    %c0_i32_0 = arith.constant 0 : i32
    return %arg0, %c0_i32 : i32, i32
  }
  func.func @transform_1(%arg0: i32) -> (i32, i32) {
    %c0_i32 = arith.constant 0 : i32
    %c0_i32_0 = arith.constant 0 : i32
    %c0_i32_1 = arith.constant 0 : i32
    return %c0_i32, %c0_i32_0 : i32, i32
  }
  func.func @transform_2(%arg0: i32) -> (i32, i32) {
    %c0_i32 = arith.constant 0 : i32
    %c0_i32_0 = arith.constant 0 : i32
    %c0_i32_1 = arith.constant 0 : i32
    return %c0_i32, %c0_i32_0 : i32, i32
  }
  func.func @transform_3(%arg0: i32) -> (i32, i32) {
    %c0_i32 = arith.constant 0 : i32
    %c0_i32_0 = arith.constant 0 : i32
    %c0_i32_1 = arith.constant 0 : i32
    return %c0_i32, %c0_i32_0 : i32, i32
  }
  func.func @transform_4(%arg0: i32) -> (i32, i32) {
    %c0_i32 = arith.constant 0 : i32
    %c0_i32_0 = arith.constant 0 : i32
    %c0_i32_1 = arith.constant 0 : i32
    return %c0_i32, %c0_i32_0 : i32, i32
  }
  func.func @transform_5(%arg0: i32) -> (i32, i32) {
    %c0_i32 = arith.constant 0 : i32
    %c0_i32_0 = arith.constant 0 : i32
    return %arg0, %c0_i32 : i32, i32
  }
}

</mosaic_0001>

<bundles_post_ra>
// kernel: mlp_forward.1
= control target key start
LH: loop header
LB: loop body
LE: loop exit
PB: predicated region body
PF: predicated region fallthrough
CT: control target
= control target key end

     0   :  { %10 = vsyncpa [#allocation3], 0  ;;  %s1155_s0 = inlined_call_operand.hbm [shape: f32[16,128], index: 0, kind: input, shape index: {}]   ;;  %s1156_s1 = inlined_call_operand.hbm [shape: f32[128,256], index: 1, kind: input, shape index: {}]   ;;  %s1157_s2 = inlined_call_operand.vmem [shape: f32[1,256], index: 2, kind: input, shape index: {}]   ;;  %s1158_s3 = inlined_call_operand.hbm [shape: f32[256,128], index: 3, kind: input, shape index: {}]   ;;  %s1159_s4 = inlined_call_operand.vmem [shape: f32[1,128], index: 4, kind: input, shape index: {}]   ;;  %s1160_s5 = inlined_call_operand.hbm [shape: f32[16,128], index: 5, kind: output, shape index: {}]  }
   0x1   :  { %12 = vsyncpa [#allocation3 + $0x1], 0 }
   0x2   :  { %13 = vsyncpa [#allocation6], 0 }
   0x3   :  { %14 = vsyncpa [#allocation4], 0 }
   0x4   :  { %16 = vsyncpa [#allocation4 + $0x1], 0  ;;  %s977_s18 = smov 0   ;;  %s979_s19 = smov 0  }
   0x5   :  { %s981_s20 = smov 0   ;;  %s983_s21 = smov 0  }
   0x6 LB: > { %s998_s22 = sadd.s32 4294967295, %s936_s21   ;;  %s656_s23 = sadd.s32 4294967294, %s936_s21   ;;  %s936_s21 = sphi %s983_s21, %s1182_s21   ;;  %s932_s20 = sphi %s981_s20, %s1181_s20   ;;  %s928_s19 = sphi %s979_s19, %s1180_s19   ;;  %s924_s18 = sphi %s977_s18, %s1179_s18  }
   0x7   : > { %p42_p0 = scmp.ne.s32.totalorder %s928_s19, %s924_s18  ;;  %p1161_p1 = scmp.eq.s32.totalorder %s998_s22, 0 }
   0x8   : > { %p156_p3 = scmp.eq.s32.totalorder %s656_s23, 1  ;;  %p657_p5 = scmp.ge.s32.totalorder %s936_s21, 1 }
   0x9   : > { %p1007_p4 = por %p1161_p1, %p42_p0  ;;  %p163_p7 = scmp.lt.s32.totalorder %s936_s21, 3 }
   0xa   : > { %p1012_p6 = por %p156_p3, %p42_p0  ;;  %s938_s27 = smov [#allocation5]  }
   0xb   : > { %s1165_s24 = scalar_select %p1007_p4, 1, 0 }
   0xc   : > { %s1166_s25 = scalar_select %p1012_p6, 1, 0 }
   0xd   : > { %p1017_p8 = pnand %p657_p5, %p163_p7  ;;  %s175_s28 = sshll.u32 %s938_s27, 4  ;;  %s176_s28 = int_to_ptr.vmem [resolvable:$true] %s175_s28 }
   0xe   : > { %s939_s30 = smov [#allocation7]   ;;  %s799_s7 = scalar_lea.vmem %s176_s28, 4096 }
   0xf   : > { %s1167_s26 = scalar_select %p1017_p8, 1, 0 }
  0x10   : > { %p720_p9 = pneg %p1017_p8  ;;  %s191_s6 = sshll.u32 %s939_s30, 4  ;;  %s192_s6 = int_to_ptr.vmem [resolvable:$true] %s191_s6 }
  0x11   : > { %p800_p13 = scmp.ne.s32.totalorder %s176_s28, %s799_s7  ;;  %p807_p5 = scmp.lt.s32.totalorder %s176_s28, %s176_s28 }
  0x12   : > { %p1026_p11 = pnand %p720_p9, %p1161_p1  ;;  %p808_p7 = scmp.lt.s32.totalorder %s799_s7, %s799_s7 }
  0x14   : > { %p790_p12 = pneg %p1026_p11  ;;  %p809_p10 = por %p808_p7, %p807_p5 }
  0x16   : > { %p802_p0 = pnand %p800_p13, %p790_p12 }
  0x18   : > { %p803_p3 = pneg %p802_p0 }
  0x1a   : > { %p810_p9 = pnand %p809_p10, %p803_p3 }
  0x1c   : > { %813 = shalt.err (!%p810_p9)
}
  0x1d   : > { %s940_s8 = smov 256   ;;  %s941_s9 = smov 16  }
  0x1e   : > { %723 = dma.hbm_to_vmem [thread:$0]  (!%p1026_p11), %s1156_s1, 4096, %s176_s28, [#allocation6], %s940_s8, %s940_s8, %s941_s9  }
  0x1f   : > { %s825_s12 = scalar_lea.vmem %s192_s6, 4096  ;;  %p833_p2 = scmp.lt.s32.totalorder %s192_s6, %s192_s6 }
  0x20   : > { %p826_p1 = scmp.ne.s32.totalorder %s192_s6, %s825_s12  ;;  %p834_p6 = scmp.lt.s32.totalorder %s825_s12, %s825_s12 }
  0x22   : > { %p828_p13 = pnand %p826_p1, %p790_p12  ;;  %p835_p5 = por %p834_p6, %p833_p2 }
  0x24   : > { %p829_p0 = pneg %p828_p13 }
  0x26   : > { %p836_p10 = pnand %p835_p5, %p829_p0 }
  0x28   : > { %839 = shalt.err (!%p836_p10)
}
  0x29   : > { %s942_s13 = smov 128   ;;  %s943_s14 = smov 8  }
  0x2a   : > { %726 = dma.hbm_to_vmem [thread:$0]  (!%p1026_p11), %s1158_s3, 4096, %s192_s6, [#allocation6], %s942_s13, %s942_s13, %s943_s14  }
  0x2b   : > { %s1049_s17 = sadd.s32 1, %s936_s21   ;;  %s29_s27 = sadd.s32 1, %s932_s20 }
  0x2c   : > { %s26_s23 = ssub.s32 %s936_s21, %s1049_s17  ;;  %p36_p2 = scmp.ne.s32.totalorder %s932_s20, %s928_s19 }
  0x2d   : > { %p27_p1 = scmp.eq.s32.totalorder %s26_s23, 0  ;;  %p37_p6 = scmp.eq.s32.totalorder %s936_s21, 0 }
  0x2e   : > { %p1169_p3 = scmp.eq.s32.totalorder %s998_s22, 1  ;;  %p737_p9 = scmp.lt.s32.totalorder %s936_s21, 2 }
  0x2f   : > { %s1058_s28 = scalar_select %p27_p1, %s932_s20, %s29_s27  }
  0x30   : > { %p38_p12 = por %p37_p6, %p36_p2  ;;  %p1062_p7 = por %p1169_p3, %p36_p2 }
  0x31   : > { %s208_s29 = sand.u32 1, %s932_s20   ;;  %s662_s6 = sshll.u32 %s936_s21, 7 }
  0x32   : > { %s1170_s30 = scalar_select %p1062_p7, 1, 0 }
  0x33   : > { %s661_s7 = sshll.u32 %s208_s29, 3  ;;  %s1072_s10 = scalar_lea.hbm %s1155_s0, %s662_s6 }
  0x34   : > { %s212_s11 = scalar_lea.vmem [#allocation2], %s661_s7  ;;  %p1074_p11 = pnand %p737_p9, %p38_p12 }
  0x35   : > { %s219_s12 = sshll.u32 %s212_s11, 4  ;;  %s209_s14 = scalar_lea.sflag [#allocation3], %s208_s29  ;;  %s220_s12 = int_to_ptr.vmem [resolvable:$true] %s219_s12 }
  0x36   : > { %s840_s15 = scalar_lea.hbm %s1072_s10, 128  ;;  %p842_p0 = pneg %p1074_p11 }
  0x37   : > { %p841_p13 = scmp.ne.s32.totalorder %s1072_s10, %s840_s15  ;;  %s845_s27 = scalar_lea.hbm %s1155_s0, 256 }
  0x38   : > { %p846_p1 = scmp.lt.s32.totalorder %s1072_s10, %s1155_s0  ;;  %p847_p2 = scmp.lt.s32.totalorder %s845_s27, %s840_s15 }
  0x39   : > { %p843_p5 = pnand %p842_p0, %p841_p13 }
  0x3a   : > { %p848_p6 = por %p847_p2, %p846_p1 }
  0x3b   : > { %p844_p10 = pneg %p843_p5 }
  0x3d   : > { %p849_p12 = pnand %p848_p6, %p844_p10 }
  0x3f   : > { %852 = shalt.err (!%p849_p12)
}
  0x40   : > { %s853_s8 = scalar_lea.vmem %s220_s12, 128  ;;  %s944_s29 = smov [#allocation2]  }
  0x41   : > { %p854_p3 = scmp.ne.s32.totalorder %s220_s12, %s853_s8  ;;  %s858_s9 = sshll.u32 %s944_s29, 4  ;;  %s859_s9 = int_to_ptr.vmem [resolvable:$false] %s858_s9 }
  0x42   : > { %s860_s11 = scalar_lea.vmem %s859_s9, 256  ;;  %p861_p13 = scmp.lt.s32.totalorder %s220_s12, %s859_s9 }
  0x43   : > { %p856_p9 = pnand %p854_p3, %p842_p0  ;;  %p862_p5 = scmp.lt.s32.totalorder %s860_s11, %s853_s8 }
  0x45   : > { %p857_p7 = pneg %p856_p9  ;;  %p863_p4 = por %p862_p5, %p861_p13 }
  0x47   : > { %p864_p8 = pnand %p863_p4, %p857_p7 }
  0x49   : > { %867 = shalt.err (!%p864_p8)
}
  0x4a   : > { %730 = dma.hbm_to_vmem [thread:$0]  (!%p1074_p11), %s1072_s10, 128, %s220_s12, %s209_s14  }
  0x4b   : > { %p1172_p10 = scmp.ne.s32.totalorder %s1167_s26, 0 }
  0x4c   : > { %s1095_s15 = sand.u32 (!%p1172_p10), 1, %s928_s19   ;;  %p1173_p4 = scmp.ne.s32.totalorder (!%p1172_p10), %s1165_s24, 0 }
  0x4d   : > { %228 = sbr.rel (%p1172_p10) target bundleno = 586 (0x24a), region = 40  ;;  %s664_s16 = sshll.u32 (!%p1172_p10), %s1095_s15, 3 }
  0x4e   : > { %s231_s23 = scalar_lea.sflag (!%p1172_p10), [#allocation3], %s1095_s15  ;;  %s1101_s27 = scalar_lea.vmem (!%p1172_p10), [#allocation2], %s664_s16 }
  0x52   : > { %911 = dma.done.wait (%p1173_p4), %s231_s23, 128  }
  0x53   : > { %913 = vsyncadd (%p1173_p4), %s231_s23, 4294967168  ;;  %p1174_p8 = scmp.eq.s32.totalorder %s998_s22, 0 }
  0x55   : > { %915 = dma.done.wait (%p1174_p8), [#allocation6], 8192   ;;  %p1175_p7 = pmov %p1174_p8 }
  0x56   : > { %v945_v0 = vmov 0.0   ;;  %v301_v1 = vld [vmem:[#allocation5 + $0xf8] sm:$0xff]  ;;  %v300_v2 = vld [vmem:[#allocation5 + $0xf0] sm:$0xff]  ;;  %v299_v3 = vld [vmem:[#allocation5 + $0xe8] sm:$0xff]  ;;  %s670_s13 = sshll.u32 %s998_s22, 7  ;;  %s268_s14 = scalar_lea.vmem [#allocation8], %s664_s16 }
  0x57   : > { %917 = vsyncadd (%p1175_p7), [#allocation6], 4294959104  ;;  %378 = vmatprep.mubr.f32.mxu0 %v945_v0  ;;  %314 = vmatprep.subr.mxu0 %v301_v1  ;;  %v298_v4 = vld [vmem:[#allocation5 + $0xe0] sm:$0xff]  ;;  %v297_v5 = vld [vmem:[#allocation5 + $0xd8] sm:$0xff]  ;;  %s567_s6 = sshll.u32 %s268_s14, 4  ;;  %s565_s29 = scalar_lea.hbm %s1160_s5, %s670_s13  ;;  %s568_s6 = int_to_ptr.vmem [resolvable:$true] %s567_s6 }
  0x58   : > { %315 = vmatpush1.msra.mxu0 %v300_v2  ;;  %v296_v6 = vld [vmem:[#allocation5 + $0xd0] sm:$0xff]  ;;  %v295_v7 = vld [vmem:[#allocation5 + $0xc8] sm:$0xff]  ;;  %v294_v8 = vld [vmem:[#allocation5 + $0xc0] sm:$0xff]  ;;  %v304_v2 = vlaneseq  ;;  %s554_s9 = scalar_lea.sflag [#allocation4], %s1095_s15  ;;  %s868_s11 = scalar_lea.vmem %s568_s6, 128 }
  0x59   : > { %316 = vmatprep.subr.mxu0 %v299_v3  ;;  %v293_v9 = vld [vmem:[#allocation5 + $0xb8] sm:$0xff]  ;;  %v292_v10 = vld [vmem:[#allocation5 + $0xb0] sm:$0xff]  ;;  %v291_v11 = vld [vmem:[#allocation5 + $0xa8] sm:$0xff]  ;;  %p869_p11 = scmp.ne.s32.totalorder %s568_s6, %s868_s11  ;;  %p1176_p0 = scmp.ne.s32.totalorder %s1170_s30, 0 }
  0x5a   : > { %317 = vmatpush1.msra.mxu0 %v298_v4  ;;  %v290_v12 = vld [vmem:[#allocation5 + $0xa0] sm:$0xff]  ;;  %v289_v13 = vld [vmem:[#allocation5 + $0x98] sm:$0xff]  ;;  %v288_v14 = vld [vmem:[#allocation5 + $0x90] sm:$0xff]  ;;  %v305_v3 = vshrl.u32 %v304_v2, 7  ;;  %s946_s23 = smov [#allocation8]  }
  0x5b   : > { %318 = vmatprep.subr.mxu0 %v297_v5  ;;  %v287_v15 = vld [vmem:[#allocation5 + $0x88] sm:$0xff]  ;;  %v286_v16 = vld [vmem:[#allocation5 + $0x80] sm:$0xff]  ;;  %v285_v17 = vld [vmem:[#allocation5 + $0x78] sm:$0xff]  ;;  %p870_p1 = pnand %p869_p11, %p1176_p0 }
  0x5c   : > { %319 = vmatpush1.msra.mxu0 %v296_v6  ;;  %v284_v18 = vld [vmem:[#allocation5 + $0x70] sm:$0xff]  ;;  %v283_v19 = vld [vmem:[#allocation5 + $0x68] sm:$0xff]  ;;  %v282_v20 = vld [vmem:[#allocation5 + $0x60] sm:$0xff]  ;;  %v306_v4 = vsub.s32 0, %v305_v3  ;;  %v310_v6 = vsub.s32 1, %v305_v3 }
  0x5d   : > { %320 = vmatprep.subr.mxu0 %v295_v7  ;;  %v281_v21 = vld [vmem:[#allocation5 + $0x58] sm:$0xff]  ;;  %v280_v22 = vld [vmem:[#allocation5 + $0x50] sm:$0xff]  ;;  %v279_v23 = vld [vmem:[#allocation5 + $0x48] sm:$0xff]  ;;  %p871_p2 = pneg %p870_p1 }
  0x5e   : > { %321 = vmatpush1.msra.mxu0 %v294_v8  ;;  %v278_v24 = vld [vmem:[#allocation5 + $0x40] sm:$0xff]  ;;  %v277_v25 = vld [vmem:[#allocation5 + $0x38] sm:$0xff]  ;;  %v276_v26 = vld [vmem:[#allocation5 + $0x30] sm:$0xff] }
  0x5f   : > { %322 = vmatprep.subr.mxu0 %v293_v9  ;;  %v275_v27 = vld [vmem:[#allocation5 + $0x28] sm:$0xff]  ;;  %v274_v28 = vld [vmem:[#allocation5 + $0x20] sm:$0xff]  ;;  %v273_v29 = vld [vmem:[#allocation5 + $0x18] sm:$0xff] }
  0x60   : > { %323 = vmatpush1.msra.mxu0 %v292_v10  ;;  %v272_v30 = vld [vmem:[#allocation5 + $0x10] sm:$0xff]  ;;  %v271_v31 = vld [vmem:[#allocation5 + $0x8] sm:$0xff]  ;;  %v270_v32 = vld [vmem:[#allocation5] sm:$0xff] }
  0x61   : > { %324 = vmatprep.subr.mxu0 %v291_v11  ;;  %v269_v33 = vld [vmem:[%s1101_s27] sm:$0xff]  ;;  %v472_v38 = vld [vmem:[#allocation7 + $0xe8] sm:$0xff]  ;;  %v471_v40 = vld [vmem:[#allocation7 + $0xe0] sm:$0xff]  ;;  %s872_s27 = sshll.u32 %s946_s23, 4  ;;  %s873_s27 = int_to_ptr.vmem [resolvable:$false] %s872_s27 }
  0x62   : > { %325 = vmatpush1.msra.mxu0 %v290_v12  ;;  %v474_v34 = vld [vmem:[#allocation7 + $0xf8] sm:$0xff]  ;;  %v473_v36 = vld [vmem:[#allocation7 + $0xf0] sm:$0xff]  ;;  %v456_v39 = vld [vmem:[#allocation7 + $0x68] sm:$0xff]  ;;  %s874_s22 = scalar_lea.vmem %s873_s27, 256  ;;  %p875_p6 = scmp.lt.s32.totalorder %s568_s6, %s873_s27 }
  0x63   : > { %326 = vmatprep.subr.mxu0 %v289_v13  ;;  %673 = vmatprep.subr.mxu1 %v474_v34  ;;  %v458_v35 = vld [vmem:[#allocation7 + $0x78] sm:$0xff]  ;;  %v457_v37 = vld [vmem:[#allocation7 + $0x70] sm:$0xff]  ;;  %v455_v41 = vld [vmem:[#allocation7 + $0x60] sm:$0xff]  ;;  %p876_p12 = scmp.lt.s32.totalorder %s874_s22, %s868_s11 }
  0x64   : > { %327 = vmatpush1.msra.mxu0 %v288_v14  ;;  %674 = vmatpush3.msra.mxu1 %v458_v35  ;;  %v470_v42 = vld [vmem:[#allocation7 + $0xd8] sm:$0xff]  ;;  %v469_v44 = vld [vmem:[#allocation7 + $0xd0] sm:$0xff]  ;;  %v468_v46 = vld [vmem:[#allocation7 + $0xc8] sm:$0xff] }
  0x65   : > { %328 = vmatprep.subr.mxu0 %v287_v15  ;;  %675 = vmatprep.subr.mxu1 %v473_v36  ;;  %v454_v43 = vld [vmem:[#allocation7 + $0x58] sm:$0xff]  ;;  %v453_v45 = vld [vmem:[#allocation7 + $0x50] sm:$0xff]  ;;  %v452_v47 = vld [vmem:[#allocation7 + $0x48] sm:$0xff]  ;;  %p877_p3 = por %p876_p12, %p875_p6 }
  0x66   : > { %329 = vmatpush1.msra.mxu0 %v286_v16  ;;  %676 = vmatpush3.msra.mxu1 %v457_v37  ;;  %v467_v48 = vld [vmem:[#allocation7 + $0xc0] sm:$0xff]  ;;  %v466_v50 = vld [vmem:[#allocation7 + $0xb8] sm:$0xff]  ;;  %v465_v52 = vld [vmem:[#allocation7 + $0xb0] sm:$0xff] }
  0x67   : > { %330 = vmatprep.subr.mxu0 %v285_v17  ;;  %677 = vmatprep.subr.mxu1 %v472_v38  ;;  %v451_v49 = vld [vmem:[#allocation7 + $0x40] sm:$0xff]  ;;  %v450_v51 = vld [vmem:[#allocation7 + $0x38] sm:$0xff]  ;;  %v449_v53 = vld [vmem:[#allocation7 + $0x30] sm:$0xff]  ;;  %p878_p9 = pnand %p877_p3, %p871_p2 }
  0x68   : > { %331 = vmatpush1.msra.mxu0 %v284_v18  ;;  %678 = vmatpush3.msra.mxu1 %v456_v39  ;;  %v464_v54 = vld [vmem:[#allocation7 + $0xa8] sm:$0xff]  ;;  %v463_v56 = vld [vmem:[#allocation7 + $0xa0] sm:$0xff]  ;;  %v462_v58 = vld [vmem:[#allocation7 + $0x98] sm:$0xff] }
  0x69   : > { %332 = vmatprep.subr.mxu0 %v283_v19  ;;  %679 = vmatprep.subr.mxu1 %v471_v40  ;;  %v448_v55 = vld [vmem:[#allocation7 + $0x28] sm:$0xff]  ;;  %v447_v57 = vld [vmem:[#allocation7 + $0x20] sm:$0xff]  ;;  %v446_v59 = vld [vmem:[#allocation7 + $0x18] sm:$0xff] }
  0x6a   : > { %333 = vmatpush1.msra.mxu0 %v282_v20  ;;  %680 = vmatpush3.msra.mxu1 %v455_v41  ;;  %v461_v60 = vld [vmem:[#allocation7 + $0x90] sm:$0xff]  ;;  %v460_v62 = vld [vmem:[#allocation7 + $0x88] sm:$0xff]  ;;  %v459_v0 = vld [vmem:[#allocation7 + $0x80] sm:$0xff] }
  0x6b   : > { %334 = vmatprep.subr.mxu0 %v281_v21  ;;  %681 = vmatprep.subr.mxu1 %v470_v42  ;;  %v445_v61 = vld [vmem:[#allocation7 + $0x10] sm:$0xff]  ;;  %v444_v63 = vld [vmem:[#allocation7 + $0x8] sm:$0xff]  ;;  %v443_v1 = vld [vmem:[#allocation7] sm:$0xff] }
  0x6c   : > { %335 = vmatpush1.msra.mxu0 %v280_v22  ;;  %682 = vmatpush3.msra.mxu1 %v454_v43  ;;  %v302_v5 = vld [vmem:[%s1157_s2] sm:$0x3] }
  0x6d   : > { %336 = vmatprep.subr.mxu0 %v279_v23  ;;  %683 = vmatprep.subr.mxu1 %v469_v44  ;;  %v307_v7 = vrot.slane %v302_v5, %v306_v4  ;;  %v311_v8 = vrot.slane %v302_v5, %v310_v6  ;;  %v668_v6 = vld [vmem:[%s1159_s4] ss:$0 sm:$0xff] }
  0x6e   : > { %337 = vmatpush1.msra.mxu0 %v278_v24  ;;  %684 = vmatpush3.msra.mxu1 %v453_v45 }
  0x6f   : > { %338 = vmatprep.subr.mxu0 %v277_v25  ;;  %685 = vmatprep.subr.mxu1 %v468_v46 }
  0x70   : > { %339 = vmatpush1.msra.mxu0 %v276_v26  ;;  %686 = vmatpush3.msra.mxu1 %v452_v47 }
  0x71   : > { %340 = vmatprep.subr.mxu0 %v275_v27  ;;  %687 = vmatprep.subr.mxu1 %v467_v48 }
  0x72   : > { %341 = vmatpush1.msra.mxu0 %v274_v28  ;;  %688 = vmatpush3.msra.mxu1 %v451_v49 }
  0x73   : > { %342 = vmatprep.subr.mxu0 %v273_v29  ;;  %689 = vmatprep.subr.mxu1 %v466_v50 }
  0x74   : > { %343 = vmatpush1.msra.mxu0 %v272_v30  ;;  %690 = vmatpush3.msra.mxu1 %v450_v51 }
  0x75   : > { %344 = vmatprep.subr.mxu0 %v271_v31  ;;  %691 = vmatprep.subr.mxu1 %v465_v52 }
  0x76   : > { %345 = vmatpush1.msra.mxu0 %v270_v32  ;;  %692 = vmatpush3.msra.mxu1 %v449_v53 }
  0x77   : > { %379 = vmatmul.mubr.f32.vlgmr.msra.gmra.mxu0 %v269_v33  ;;  %693 = vmatprep.subr.mxu1 %v464_v54 }
  0x78   : > { %694 = vmatpush3.msra.mxu1 %v448_v55 }
  0x79   : > { %695 = vmatprep.subr.mxu1 %v463_v56 }
  0x7a   : > { %696 = vmatpush3.msra.mxu1 %v447_v57 }
  0x7b   : > { %697 = vmatprep.subr.mxu1 %v462_v58 }
  0x7c   : > { %698 = vmatpush3.msra.mxu1 %v446_v59 }
  0x7d   : > { %699 = vmatprep.subr.mxu1 %v461_v60 }
  0x7e   : > { %700 = vmatpush3.msra.mxu1 %v445_v61 }
  0x7f   : > { %701 = vmatprep.subr.mxu1 %v460_v62 }
  0x80   : > { %702 = vmatpush3.msra.mxu1 %v444_v63 }
  0x81   : > { %703 = vmatprep.subr.mxu1 %v459_v0 }
  0x82   : > { %704 = vmatpush3.msra.mxu1 %v443_v1 }
 0x137   : > { %v380_v9 = vpop.f32.mrf.mxu0 }
 0x138   : > { %v381_v10 = vadd.f32 %v380_v9, %v307_v7 }
 0x139   : > { %v382_v11 = vpop.f32.mrf.mxu0 }
 0x13a   : > { %v387_v12 = vmul.f32 0.70710677, %v381_v10  ;;  %v383_v13 = vadd.f32 %v382_v11, %v311_v8  ;;  %v385_v2 = vmul.f32 0.5, %v381_v10 }
 0x13c   : > { %v389_v14 = vand.u32 2147483647, %v387_v12  ;;  %v388_v15 = vmul.f32 0.70710677, %v383_v13  ;;  %vm433_vm0 = vcmp.lt.f32.partialorder %v387_v12, 0.0  ;;  %v386_v0 = vmul.f32 0.5, %v383_v13 }
 0x13e   : > { %v391_v16 = vmul.f32 0.3275911, %v389_v14  ;;  %v390_v17 = vand.u32 2147483647, %v388_v15  ;;  %v421_v21 = vsub.f32 0.0, %v389_v14  ;;  %vm434_vm1 = vcmp.lt.f32.partialorder %v388_v15, 0.0 }
 0x140   : > { %v393_v18 = vadd.f32 1.0, %v391_v16  ;;  %v392_v19 = vmul.f32 0.3275911, %v390_v17  ;;  %v422_v24 = vsub.f32 0.0, %v390_v17  ;;  %v423_v27 = vmul.f32 %v421_v21, %v389_v14 }
 0x142   : > { %780 = vrcp.f32 %v393_v18  ;;  %v394_v20 = vadd.f32 1.0, %v392_v19  ;;  %v424_v31 = vmul.f32 %v422_v24, %v390_v17  ;;  %v425_v32 = vmul.f32 1.442695, %v423_v27 }
 0x144   : > { %782 = vrcp.f32 %v394_v20  ;;  %v427_v36 = vmul.f32 1.442695, %v424_v31 }
 0x145   : > { %784 = vpow2.f32 %v425_v32 }
 0x146   : > { %786 = vpow2.f32 %v427_v36 }
 0x14f   : > { %v781_v22 = vpop.eup %780 }
 0x150   : > { %v397_v23 = vmul.f32 %v781_v22, %v393_v18 }
 0x151   : > { %v783_v25 = vpop.eup %782 }
 0x152   : > { %v399_v26 = vsub.f32 2.0, %v397_v23  ;;  %v398_v28 = vmul.f32 %v783_v25, %v394_v20  ;;  %v785_v51 = vpop.eup %784 }
 0x153   : > { %v787_v55 = vpop.eup %786 }
 0x154   : > { %v401_v29 = vmul.f32 %v781_v22, %v399_v26  ;;  %v400_v30 = vsub.f32 2.0, %v398_v28 }
 0x156   : > { %v403_v33 = vmul.f32 1.0614054, %v401_v29  ;;  %v402_v34 = vmul.f32 %v783_v25, %v400_v30 }
 0x158   : > { %v405_v35 = vadd.f32 -1.4531521, %v403_v33  ;;  %v404_v37 = vmul.f32 1.0614054, %v402_v34 }
 0x15a   : > { %v407_v38 = vmul.f32 %v405_v35, %v401_v29  ;;  %v406_v39 = vadd.f32 -1.4531521, %v404_v37 }
 0x15c   : > { %v409_v40 = vadd.f32 1.4214138, %v407_v38  ;;  %v408_v41 = vmul.f32 %v406_v39, %v402_v34 }
 0x15e   : > { %v411_v42 = vmul.f32 %v409_v40, %v401_v29  ;;  %v410_v43 = vadd.f32 1.4214138, %v408_v41 }
 0x160   : > { %v413_v44 = vadd.f32 -0.28449672, %v411_v42  ;;  %v412_v45 = vmul.f32 %v410_v43, %v402_v34 }
 0x162   : > { %v415_v46 = vmul.f32 %v413_v44, %v401_v29  ;;  %v414_v47 = vadd.f32 -0.28449672, %v412_v45 }
 0x164   : > { %v417_v48 = vadd.f32 0.2548296, %v415_v46  ;;  %v416_v49 = vmul.f32 %v414_v47, %v402_v34 }
 0x166   : > { %v419_v50 = vmul.f32 %v417_v48, %v401_v29  ;;  %v418_v52 = vadd.f32 0.2548296, %v416_v49 }
 0x168   : > { %v429_v53 = vmul.f32 %v785_v51, %v419_v50  ;;  %v420_v54 = vmul.f32 %v418_v52, %v402_v34 }
 0x16a   : > { %v431_v56 = vsub.f32 1.0, %v429_v53  ;;  %v430_v57 = vmul.f32 %v787_v55, %v420_v54 }
 0x16c   : > { %v435_v58 = vsub.f32 0.0, %v431_v56  ;;  %v432_v59 = vsub.f32 1.0, %v430_v57 }
 0x16e   : > { %v437_v60 = vsel %vm433_vm0, %v435_v58, %v431_v56  ;;  %v436_v61 = vsub.f32 0.0, %v432_v59 }
 0x16f   : > { %v439_v63 = vadd.f32 1.0, %v437_v60 }
 0x170   : > { %v438_v62 = vsel %vm434_vm1, %v436_v61, %v432_v59 }
 0x171   : > { %v440_v1 = vadd.f32 1.0, %v438_v62  ;;  %v441_v4 = vmul.f32 %v439_v63, %v385_v2 }
 0x173   : > { %v442_v3 = vmul.f32 %v440_v1, %v386_v0 }
 0x175   : > { %546 = vmatprep.mubr.f32.mxu1 %v442_v3 }
 0x176   : > { %547 = vmatmul.mubr.f32.vlgmr.msra.gmra.mxu1 %v441_v4 }
 0x236   : > { %v705_v5 = vpop.f32.mrf.mxu1 }
 0x238   : > { %v706_v7 = vpop.f32.mrf.mxu1 }
 0x239   : > { %v707_v8 = vadd.f32 %v706_v7, %v705_v5 }
 0x23b   : > { %v549_v9 = vadd.f32 %v707_v8, %v668_v6 }
 0x23d   : > { %552 = vst [vmem:[%s268_s14] sm:$0xff] %v549_v9 }
 0x23e   : > { %881 = shalt.err (!%p878_p9)
}
 0x23f   : > { %s882_s16 = scalar_lea.hbm %s565_s29, 128  ;;  %s886_s26 = scalar_lea.hbm %s1160_s5, 256 }
 0x240   : > { %p883_p13 = scmp.ne.s32.totalorder %s565_s29, %s882_s16  ;;  %p887_p4 = scmp.lt.s32.totalorder %s565_s29, %s1160_s5 }
 0x241   : > { %p888_p8 = scmp.lt.s32.totalorder %s886_s26, %s882_s16 }
 0x242   : > { %p884_p5 = pnand %p883_p13, %p1176_p0 }
 0x243   : > { %p889_p7 = por %p888_p8, %p887_p4 }
 0x244   : > { %p885_p10 = pneg %p884_p5 }
 0x246   : > { %p890_p11 = pnand %p889_p7, %p885_p10 }
 0x248   : > { %893 = shalt.err (!%p890_p11)
}
 0x249   : > { %718 = dma.vmem_to_hbm [thread:$0]  (%p1176_p0), %s568_s6, 128, %s565_s29, %s554_s9  }
 0x24a PF: > { %s579_s13 = sand.u32 1, %s924_s18   ;;  %p1177_p1 = scmp.ne.s32.totalorder %s1166_s25, 0 }
 0x24b   : > { %p1178_p2 = scmp.ge.s32.totalorder %s936_s21, 2  ;;  %s580_s14 = scalar_lea.sflag [#allocation4], %s579_s13 }
 0x24d   : > { %p732_p6 = pnand %p1178_p2, %p1177_p1 }
 0x24f   : > { %p733_p12 = pneg %p732_p6 }
 0x251   : > { %919 = dma.done.wait (%p733_p12), %s580_s14, 128  }
 0x252   : > { %921 = vsyncadd (%p733_p12), %s580_s14, 4294967168  ;;  %p19_p3 = scmp.ge.s32.totalorder %s1049_s17, 4   ;;  %s1179_s18 = smov %s928_s19 }
 0x253   : > { %s1180_s19 = smov %s932_s20  ;;  %s1181_s20 = smov %s1058_s28 }
 0x254   : > { %s1182_s21 = smov %s1049_s17  ;;  %21 = sbr.rel (!%p19_p3) target bundleno = 6 (0x6), region = 93 }
 0x259   :  { %585 = vsyncpa [#allocation3], 1 }
 0x25a   :  { %587 = vsyncpa [#allocation3 + $0x1], 1 }
 0x25b   :  { %588 = vsyncpa [#allocation6], 1 }
 0x25c   :  { %589 = vsyncpa [#allocation4], 1 }
 0x25d   :  { %591 = vsyncpa [#allocation4 + $0x1], 1 }

</bundles_post_ra>
